<compile_context>
chip_gen: v6e
topology: v6e:2x2x1
jax: 0.10.0
libtpu: 0.0.40
codegen_flags: <defaults>
</compile_context>

<pallas_src>
import functools
import math

import jax
import jax.numpy as jnp
from jax.experimental import pallas as pl
from jax.experimental.pallas import tpu as pltpu

MIN_NORM = 1e-15
BALL_EPS = 4e-3  # Poincare-ball boundary eps for float32 (HNN convention)


def _round_up(a, b):
    return (a + b - 1) // b * b


def _artanh_col(z):
    # artanh on a narrow (TM, 1) column; single log of the ratio (one EUP op).
    z = jnp.clip(z, -1.0 + 1e-7, 1.0 - 1e-7)
    return 0.5 * jnp.log((1.0 + z) / (1.0 - z))


def _proj_scale(sqnorm, sqrt_c):
    # Per-row scale that clamps a point with squared norm `sqnorm` back inside the ball of
    # radius (1 - eps)/sqrt(c); exactly 1.0 for points already inside.
    norm = jnp.maximum(jnp.sqrt(sqnorm), MIN_NORM)
    maxnorm = (1.0 - BALL_EPS) / sqrt_c
    return jnp.where(norm > maxnorm, maxnorm / norm, 1.0)


def hnn_layer_kernel(x_ref, wt_ref, whb_ref, hb_ref, hbs_ref, o_ref, *,
                     c, use_bias, apply_act):
    f32 = jnp.float32
    sqrt_c = f32(math.sqrt(c))
    cf = f32(c)

    x = x_ref[...]                                   # (TM, D_in), stream dtype (bf16 default)
    wt = wt_ref[...]                                 # (D_in, D_out_p), resident, stream dtype

    xf = x.astype(f32)
    x_sq = jnp.sum(xf * xf, axis=-1, keepdims=True)             # (TM, 1)
    x_norm = jnp.maximum(jnp.sqrt(x_sq), MIN_NORM)

    # ---------------- mobius_matvec: the single big MXU pass ----------------
    mx = jnp.dot(x, wt, preferred_element_type=f32)             # (TM, D_out_p) f32 accumulate

    mx_sq = jnp.sum(mx * mx, axis=-1, keepdims=True)            # (TM, 1)
    mx_norm = jnp.maximum(jnp.sqrt(mx_sq), MIN_NORM)

    # Per-row mobius factor with the projx(mv) clamp folded in (narrow column math only).
    factor = jnp.tanh(mx_norm / x_norm * _artanh_col(sqrt_c * x_norm)) / (mx_norm * sqrt_c)
    factor = jnp.where(mx_sq == 0.0, f32(0.0), factor)          # zero rows -> exactly 0
    row_scale = factor * _proj_scale(factor * factor * mx_sq, sqrt_c)
    res_sq = row_scale * row_scale * mx_sq                      # ||projx(mv)||^2 per row

    if use_bias:
        hb = hb_ref[...]                             # (1, D_out_p) f32, already on the ball
        y2 = hbs_ref[0]                              # ||hyp_bias||^2, precomputed SMEM scalar
        # <x @ W^T, hyp_bias> via the precomputed (W^T @ hyp_bias) column: only lane 0 of the
        # (D_in, 128) operand is nonzero, so the row-sum of this tiny MXU pass is the dot.
        xy_raw = jnp.sum(jnp.dot(x, whb_ref[...], preferred_element_type=f32),
                         axis=-1, keepdims=True)     # (TM, 1)
        xy = row_scale * xy_raw                      # <projx(mv), hyp_bias>
        x2 = res_sq
        num_a = 1.0 + 2.0 * cf * xy + cf * y2
        num_b = 1.0 - cf * x2
        inv_den = 1.0 / jnp.maximum(1.0 + 2.0 * cf * xy + cf * cf * x2 * y2, MIN_NORM)
        A = (num_a * inv_den) * row_scale            # coefficient applied to raw mx
        B = num_b * inv_den                          # coefficient applied to hyp_bias
        # ||mobius_add(projx(mv), hyp_bias)||^2 in closed form (no full-width square/reduce).
        res_sq = jnp.maximum(A * A * mx_sq + 2.0 * (A * B) * xy_raw + B * B * y2, 0.0)
        pscale = _proj_scale(res_sq, sqrt_c)         # post-mobius projx, folded (not applied)
    else:
        hb = None
        A = row_scale
        B = None
        pscale = f32(1.0)                            # projx(mv) already inside row_scale

    if apply_act:
        # logmap0 at the (virtually) projected point; pscale, log_scale > 0 so they commute
        # with the ReLU and can be folded into the combine coefficients.
        res_sq_p = pscale * pscale * res_sq
        p_norm = jnp.maximum(jnp.sqrt(res_sq_p), MIN_NORM)
        log_scale = _artanh_col(sqrt_c * p_norm) / (sqrt_c * p_norm)
        s1 = pscale * log_scale
        A = s1 * A
        B = None if B is None else s1 * B
    else:
        A = pscale * A
        B = None if B is None else pscale * B

    # ---------------- single fused full-width combine ----------------
    y = A * mx if B is None else A * mx + B * hb                 # (TM, D_out_p)

    if apply_act:
        xt = jnp.maximum(y, 0.0)                                 # ReLU in the tangent space
        u_sq = jnp.sum(xt * xt, axis=-1, keepdims=True)
        u_norm = jnp.maximum(jnp.sqrt(u_sq), MIN_NORM)
        exp_scale = jnp.tanh(sqrt_c * u_norm) / (sqrt_c * u_norm)          # expmap0
        out_scale = exp_scale * _proj_scale(exp_scale * exp_scale * u_sq, sqrt_c)  # + projx
        y = out_scale * xt

    o_ref[...] = y.astype(o_ref.dtype)


def _default_block_rows():
    # 256-row tiles feed the v6e/v7x MXU (2x256); v5e (4x128 MXU, 16 MiB scoped VMEM) -> 128.
    try:
        kind = jax.devices()[0].device_kind.lower()
    except Exception:
        return 256
    return 128 if "v5" in kind else 256


def prepare_hnn_params(weight, bias, *, c=1.0, use_bias=True, matmul_dtype=jnp.bfloat16):
    """One-time parameter prep (hoisted out of the per-call path).

    weight: (D_out, D_in), bias: (D_out,).  Returns everything the kernel needs:
    MXU-natural (D_in, D_out_p) transposed/padded weight in the streaming dtype, the
    hyperbolic bias on the ball, its squared norm, and the W^T @ hyp_bias column used to
    get <x W^T, hyp_bias> from a tiny extra MXU pass.
    """
    f32 = jnp.float32
    D_out, D_in = weight.shape
    sqrt_c = math.sqrt(c)
    stream_dtype = f32 if matmul_dtype is None else matmul_dtype

    wt = weight.astype(f32).T                                    # (D_in, D_out)
    D_out_p = _round_up(D_out, 128)                              # lane-dense output stores
    wt_p = jnp.pad(wt, ((0, 0), (0, D_out_p - D_out))) if D_out_p != D_out else wt

    if use_bias:
        b = bias.reshape(1, D_out).astype(f32)                   # proj_tan0 == identity
        b_norm = jnp.maximum(jnp.linalg.norm(b, axis=-1, keepdims=True), MIN_NORM)
        hyp_bias = jnp.tanh(sqrt_c * b_norm) * b / (sqrt_c * b_norm)           # expmap0
        hb_norm = jnp.maximum(jnp.linalg.norm(hyp_bias, axis=-1, keepdims=True), MIN_NORM)
        maxnorm = (1.0 - BALL_EPS) / sqrt_c
        hyp_bias = jnp.where(hb_norm > maxnorm, hyp_bias / hb_norm * maxnorm, hyp_bias)  # projx
        y2 = jnp.sum(hyp_bias * hyp_bias).reshape(1)             # ||hyp_bias||^2
        w_hb = wt @ hyp_bias.reshape(D_out, 1)                   # (D_in, 1): x @ w_hb = <xW^T, hb>
        whb = jnp.pad(w_hb, ((0, 0), (0, 127)))                  # lane 0 only; rest zeros
        hb_p = jnp.pad(hyp_bias, ((0, 0), (0, D_out_p - D_out)))
    else:
        y2 = jnp.zeros((1,), f32)
        whb = jnp.zeros((D_in, 128), f32)
        hb_p = jnp.zeros((1, D_out_p), f32)

    return dict(wt=wt_p.astype(stream_dtype), whb=whb.astype(stream_dtype),
                hb=hb_p.astype(f32), y2=y2.astype(f32),
                c=float(c), use_bias=use_bias, matmul_dtype=matmul_dtype,
                d_in=D_in, d_out=D_out, d_out_p=D_out_p)


def hnn_layer_apply(x, params, *, apply_act=True, block_rows=None):
    """x: (N, D_in) -> (N, D_out). Applies the fused HypLinear(+bias) + HypAct forward."""
    N, D_in = x.shape
    assert D_in == params["d_in"]
    f32 = jnp.float32
    D_out, D_out_p = params["d_out"], params["d_out_p"]
    matmul_dtype = params["matmul_dtype"]
    stream_dtype = f32 if matmul_dtype is None else matmul_dtype
    xs = x if x.dtype == stream_dtype else x.astype(stream_dtype)

    if block_rows is None:
        block_rows = _default_block_rows()
    tm = max(8, min(_round_up(block_rows, 8), _round_up(N, 8)))
    if N > 8 and pl.cdiv(N, tm) < 2:          # give both v7x TensorCores work when possible
        tm = max(8, _round_up(pl.cdiv(N, 2), 8))

    x_bytes = jnp.dtype(stream_dtype).itemsize
    out_bytes = jnp.dtype(x.dtype).itemsize
    w_bytes = x_bytes

    def vmem_footprint(rows):
        tiles = 2 * rows * (D_in * x_bytes + D_out_p * out_bytes)      # double-buffered x/out
        weights = 2 * (D_in * (D_out_p + 128) * w_bytes + D_out_p * 4)  # wt + whb + hb
        temps = 6 * rows * D_out_p * 4                                  # f32 intermediates
        return tiles + weights + temps

    VMEM_BUDGET = 48 * 1024 * 1024
    while vmem_footprint(tm) > VMEM_BUDGET and tm > 8:
        tm = max(8, _round_up(tm // 2, 8))
    # TODO(synk): if the resident weight alone approaches the budget, K-tile it with a VMEM
    #             accumulator (and/or single-buffer the constant specs with pl.Buffered(1)).

    grid = (pl.cdiv(N, tm),)                 # ragged last tile: per-row math, OOB writes dropped
    kernel = functools.partial(hnn_layer_kernel, c=params["c"],
                               use_bias=params["use_bias"], apply_act=apply_act)
    cost = pl.CostEstimate(
        flops=2 * N * D_in * (D_out_p + 128) + 12 * N * D_out_p,
        transcendentals=6 * N,
        bytes_accessed=N * D_in * x_bytes + D_in * (D_out_p + 128) * w_bytes
                       + N * D_out_p * out_bytes)

    out = pl.pallas_call(
        kernel,
        out_shape=jax.ShapeDtypeStruct((N, D_out_p), x.dtype),
        grid_spec=pltpu.PrefetchScalarGridSpec(
            num_scalar_prefetch=0,
            grid=grid,
            in_specs=[
                pl.BlockSpec((tm, D_in), lambda i: (i, 0)),          # x row tile (stream dtype)
                pl.BlockSpec((D_in, D_out_p), lambda i: (0, 0)),     # resident transposed weight
                pl.BlockSpec((D_in, 128), lambda i: (0, 0)),         # resident W^T @ hyp_bias col
                pl.BlockSpec((1, D_out_p), lambda i: (0, 0)),        # hyperbolic bias (f32)
                pl.BlockSpec(memory_space=pltpu.MemorySpace.SMEM),   # ||hyp_bias||^2 scalar
            ],
            out_specs=pl.BlockSpec((tm, D_out_p), lambda i: (i, 0)),
        ),
        compiler_params=pltpu.CompilerParams(
            dimension_semantics=("parallel",),
            vmem_limit_bytes=int(min(max(2 * vmem_footprint(tm) + (8 << 20), 32 << 20),
                                     64 << 20)),
        ),
        cost_estimate=cost,
    )(xs, params["wt"], params["whb"], params["hb"], params["y2"])
    return out[:, :D_out]


def hnn_layer(x, weight, bias, *, c=1.0, use_bias=True, apply_act=True,
              matmul_dtype=jnp.bfloat16, block_rows=None):
    """Convenience one-shot wrapper: param prep + fused forward."""
    params = prepare_hnn_params(weight, bias, c=c, use_bias=use_bias, matmul_dtype=matmul_dtype)
    return hnn_layer_apply(x, params, apply_act=apply_act, block_rows=block_rows)


# -------------------- pure-JAX reference (PyTorch-style, for a sanity check) --------------------
def hnn_layer_ref(x, weight, bias, *, c=1.0, use_bias=True, apply_act=True):
    sqrt_c = math.sqrt(c)

    def artanh(z):
        z = jnp.clip(z, -1.0 + 1e-7, 1.0 - 1e-7)
        return 0.5 * (jnp.log1p(z) - jnp.log1p(-z))

    def rown(v):
        return jnp.maximum(jnp.linalg.norm(v, axis=-1, keepdims=True), MIN_NORM)

    def proj(v):
        n = rown(v)
        maxn = (1.0 - BALL_EPS) / sqrt_c
        return jnp.where(n > maxn, v / n * maxn, v)

    def expmap0(u):
        un = rown(u)
        return jnp.tanh(sqrt_c * un) * u / (sqrt_c * un)

    def logmap0(p):
        pn = rown(p)
        return (1.0 / sqrt_c) * artanh(sqrt_c * pn) / pn * p

    def mobius_add(a_, b_):
        x2 = jnp.sum(a_ * a_, -1, keepdims=True)
        y2 = jnp.sum(b_ * b_, -1, keepdims=True)
        xy = jnp.sum(a_ * b_, -1, keepdims=True)
        num = (1 + 2 * c * xy + c * y2) * a_ + (1 - c * x2) * b_
        den = 1 + 2 * c * xy + c * c * x2 * y2
        return num / jnp.maximum(den, MIN_NORM)

    x_norm = rown(x)
    mx = x @ weight.T
    mx_norm = rown(mx)
    res_c = jnp.tanh(mx_norm / x_norm * artanh(sqrt_c * x_norm)) * mx / (mx_norm * sqrt_c)
    res = jnp.where(jnp.all(mx == 0.0, axis=-1, keepdims=True), 0.0, res_c)
    res = proj(res)
    if use_bias:
        hb = proj(expmap0(bias.reshape(1, -1)))
        res = proj(mobius_add(res, hb))
    if apply_act:
        res = proj(expmap0(jax.nn.relu(logmap0(res))))
    return res


if __name__ == "__main__":
    key = jax.random.PRNGKey(0)
    kx, kw, kb = jax.random.split(key, 3)

    batch, in_features, out_features = 16, 32, 16
    c = 1.0

    # Parameter init mirroring HypLinear.reset_parameters: weight ~ xavier_uniform(gain=sqrt(2)).
    gain = math.sqrt(2.0)
    bound = gain * math.sqrt(6.0 / (in_features + out_features))
    weight = jax.random.uniform(kw, (out_features, in_features),
                                minval=-bound, maxval=bound, dtype=jnp.float32)
    # reset_parameters() sets bias = 0; a small nonzero bias is used so mobius_add is exercised.
    bias = 0.01 * jax.random.normal(kb, (out_features,), dtype=jnp.float32)
    # Input: points well inside the Poincare ball.
    x = 0.1 * jax.random.normal(kx, (batch, in_features), dtype=jnp.float32)

    # TODO(synk): dropout on the weight is training-only (eval-mode forward implemented), and
    #             the generic `act` callable of HypAct is hard-wired to ReLU (the HNN default).

    ref = hnn_layer_ref(x, weight, bias, c=c, use_bias=True, apply_act=True)

    # 1) exact-semantics path (f32 streaming + f32 MXU): tight tolerance vs the f32 reference.
    params_f32 = prepare_hnn_params(weight, bias, c=c, use_bias=True, matmul_dtype=None)
    out_f32 = jax.block_until_ready(hnn_layer_apply(x, params_f32, apply_act=True))
    assert out_f32.shape == (batch, out_features)
    err = float(jnp.max(jnp.abs(out_f32 - ref)))
    assert jnp.allclose(out_f32, ref, atol=1e-4, rtol=1e-4), f"f32 path mismatch: {err}"

    # 2) default fast path (bf16 streaming + bf16 MXU, f32 accumulate): relaxed tolerance.
    params_bf16 = prepare_hnn_params(weight, bias, c=c, use_bias=True,
                                     matmul_dtype=jnp.bfloat16)
    out_bf16 = jax.block_until_ready(hnn_layer_apply(x, params_bf16, apply_act=True))
    err = float(jnp.max(jnp.abs(out_bf16 - ref)))
    assert jnp.allclose(out_bf16, ref, atol=3e-2, rtol=3e-2), f"bf16 path mismatch: {err}"

    # 3) bias, no activation (exercises the HypLinear-only branch), f32 path.
    ref_na = hnn_layer_ref(x, weight, bias, c=c, use_bias=True, apply_act=False)
    out_na = jax.block_until_ready(hnn_layer_apply(x, params_f32, apply_act=False))
    err = float(jnp.max(jnp.abs(out_na - ref_na)))
    assert jnp.allclose(out_na, ref_na, atol=1e-4, rtol=1e-4), f"no-act mismatch: {err}"

    # 4) no bias, with activation, f32 path.
    ref_nb = hnn_layer_ref(x, weight, bias, c=c, use_bias=False, apply_act=True)
    params_nb = prepare_hnn_params(weight, bias, c=c, use_bias=False, matmul_dtype=None)
    out_nb = jax.block_until_ready(hnn_layer_apply(x, params_nb, apply_act=True))
    err = float(jnp.max(jnp.abs(out_nb - ref_nb)))
    assert jnp.allclose(out_nb, ref_nb, atol=1e-4, rtol=1e-4), f"no-bias mismatch: {err}"

    print("KERNEL_OK")
</pallas_src>

<mosaic_0001>
module attributes {stable_mosaic.version = 11 : i64} {
  func.func @hnn_layer_kernel(%arg0: i32, %arg1: memref<8x32xf32, #tpu.memory_space<vmem>>, %arg2: memref<32x128xf32, #tpu.memory_space<vmem>>, %arg3: memref<32x128xf32, #tpu.memory_space<vmem>>, %arg4: memref<1x128xf32, #tpu.memory_space<vmem>>, %arg5: memref<1xf32, #tpu.memory_space<smem>>, %arg6: memref<8x128xf32, #tpu.memory_space<vmem>>) attributes {dimension_semantics = [#tpu.dimension_semantics<parallel>], iteration_bounds = array<i64: 2>, scalar_prefetch = 0 : i64, scratch_operands = 0 : i64, tpu.core_type = #tpu.core_type<tc>, window_params = [{transform_indices = @transform_0, window_bounds = array<i64: 8, 32>}, {pipeline_mode = #tpu.pipeline_mode<synchronous>, transform_indices = @transform_1, window_bounds = array<i64: 32, 128>}, {pipeline_mode = #tpu.pipeline_mode<synchronous>, transform_indices = @transform_2, window_bounds = array<i64: 32, 128>}, {pipeline_mode = #tpu.pipeline_mode<synchronous>, transform_indices = @transform_3, window_bounds = array<i64: 1, 128>}, {transform_indices = @transform_4, window_bounds = array<i64: 1>}, {transform_indices = @transform_5, window_bounds = array<i64: 8, 128>}]} {
    %c0 = arith.constant 0 : index
    %c0_0 = arith.constant 0 : index
    %0 = vector.load %arg1[%c0, %c0_0] : memref<8x32xf32, #tpu.memory_space<vmem>>, vector<8x32xf32>
    %c0_1 = arith.constant 0 : index
    %c0_2 = arith.constant 0 : index
    %1 = vector.load %arg2[%c0_1, %c0_2] : memref<32x128xf32, #tpu.memory_space<vmem>>, vector<32x128xf32>
    %2 = arith.mulf %0, %0 : vector<8x32xf32>
    %cst = arith.constant dense<0.000000e+00> : vector<8xf32>
    %3 = vector.multi_reduction <add>, %2, %cst [1] : vector<8x32xf32> to vector<8xf32>
    %4 = vector.shape_cast %3 : vector<8xf32> to vector<8x1xf32>
    %5 = math.sqrt %4 : vector<8x1xf32>
    %cst_3 = arith.constant 1.000000e-15 : f32
    %6 = vector.broadcast %cst_3 : f32 to vector<8x1xf32>
    %7 = arith.maximumf %5, %6 : vector<8x1xf32>
    %cst_4 = arith.constant dense<0.000000e+00> : vector<8x128xf32>
    %8 = tpu.matmul %0, %1, %cst_4 {dimension_numbers = #tpu.dot_dimension_numbers<[1], [0], [0], [1], [0, 0, 1, 1], [], []>} : vector<8x32xf32>, vector<32x128xf32>, vector<8x128xf32> -> vector<8x128xf32>
    %9 = arith.mulf %8, %8 : vector<8x128xf32>
    %cst_5 = arith.constant dense<0.000000e+00> : vector<8xf32>
    %10 = vector.multi_reduction <add>, %9, %cst_5 [1] : vector<8x128xf32> to vector<8xf32>
    %11 = vector.shape_cast %10 : vector<8xf32> to vector<8x1xf32>
    %12 = math.sqrt %11 : vector<8x1xf32>
    %cst_6 = arith.constant 1.000000e-15 : f32
    %13 = vector.broadcast %cst_6 : f32 to vector<8x1xf32>
    %14 = arith.maximumf %12, %13 : vector<8x1xf32>
    %15 = arith.divf %14, %7 : vector<8x1xf32>
    %cst_7 = arith.constant 1.000000e+00 : f32
    %16 = vector.broadcast %cst_7 : f32 to vector<8x1xf32>
    %17 = arith.mulf %16, %7 : vector<8x1xf32>
    %cst_8 = arith.constant -0.99999988 : f32
    %cst_9 = arith.constant 0.99999988 : f32
    %18 = vector.broadcast %cst_8 : f32 to vector<8x1xf32>
    %19 = arith.maximumf %18, %17 : vector<8x1xf32>
    %20 = vector.broadcast %cst_9 : f32 to vector<8x1xf32>
    %21 = arith.minimumf %20, %19 : vector<8x1xf32>
    %cst_10 = arith.constant 1.000000e+00 : f32
    %22 = vector.broadcast %cst_10 : f32 to vector<8x1xf32>
    %23 = arith.addf %22, %21 : vector<8x1xf32>
    %cst_11 = arith.constant 1.000000e+00 : f32
    %24 = vector.broadcast %cst_11 : f32 to vector<8x1xf32>
    %25 = arith.subf %24, %21 : vector<8x1xf32>
    %26 = arith.divf %23, %25 : vector<8x1xf32>
    %27 = math.log %26 : vector<8x1xf32>
    %cst_12 = arith.constant 5.000000e-01 : f32
    %28 = vector.broadcast %cst_12 : f32 to vector<8x1xf32>
    %29 = arith.mulf %28, %27 : vector<8x1xf32>
    %30 = arith.mulf %15, %29 : vector<8x1xf32>
    %31 = math.tanh %30 : vector<8x1xf32>
    %cst_13 = arith.constant 1.000000e+00 : f32
    %32 = vector.broadcast %cst_13 : f32 to vector<8x1xf32>
    %33 = arith.mulf %14, %32 : vector<8x1xf32>
    %34 = arith.divf %31, %33 : vector<8x1xf32>
    %cst_14 = arith.constant 0.000000e+00 : f32
    %35 = vector.broadcast %cst_14 : f32 to vector<8x1xf32>
    %36 = arith.cmpf oeq, %11, %35 : vector<8x1xf32>
    %cst_15 = arith.constant 0.000000e+00 : f32
    %37 = vector.broadcast %cst_15 : f32 to vector<8x1xf32>
    %38 = arith.select %36, %37, %34 : vector<8x1xi1>, vector<8x1xf32>
    %39 = arith.mulf %38, %38 : vector<8x1xf32>
    %40 = arith.mulf %39, %11 : vector<8x1xf32>
    %41 = math.sqrt %40 : vector<8x1xf32>
    %cst_16 = arith.constant 1.000000e-15 : f32
    %42 = vector.broadcast %cst_16 : f32 to vector<8x1xf32>
    %43 = arith.maximumf %41, %42 : vector<8x1xf32>
    %cst_17 = arith.constant 0.995999991 : f32
    %cst_18 = arith.constant 1.000000e+00 : f32
    %44 = arith.divf %cst_17, %cst_18 : f32
    %45 = vector.broadcast %44 : f32 to vector<8x1xf32>
    %46 = arith.cmpf ogt, %43, %45 : vector<8x1xf32>
    %47 = vector.broadcast %44 : f32 to vector<8x1xf32>
    %48 = arith.divf %47, %43 : vector<8x1xf32>
    %cst_19 = arith.constant 1.000000e+00 : f32
    %49 = vector.broadcast %cst_19 : f32 to vector<8x1xf32>
    %50 = arith.select %46, %48, %49 : vector<8x1xi1>, vector<8x1xf32>
    %51 = arith.mulf %38, %50 : vector<8x1xf32>
    %52 = arith.mulf %51, %51 : vector<8x1xf32>
    %53 = arith.mulf %52, %11 : vector<8x1xf32>
    %c0_20 = arith.constant 0 : index
    %c0_21 = arith.constant 0 : index
    %54 = vector.load %arg4[%c0_20, %c0_21] : memref<1x128xf32, #tpu.memory_space<vmem>>, vector<1x128xf32>
    %c0_22 = arith.constant 0 : index
    %55 = memref.load %arg5[%c0_22] : memref<1xf32, #tpu.memory_space<smem>>
    %c0_23 = arith.constant 0 : index
    %c0_24 = arith.constant 0 : index
    %56 = vector.load %arg3[%c0_23, %c0_24] : memref<32x128xf32, #tpu.memory_space<vmem>>, vector<32x128xf32>
    %cst_25 = arith.constant dense<0.000000e+00> : vector<8x128xf32>
    %57 = tpu.matmul %0, %56, %cst_25 {dimension_numbers = #tpu.dot_dimension_numbers<[1], [0], [0], [1], [0, 0, 1, 1], [], []>} : vector<8x32xf32>, vector<32x128xf32>, vector<8x128xf32> -> vector<8x128xf32>
    %cst_26 = arith.constant dense<0.000000e+00> : vector<8xf32>
    %58 = vector.multi_reduction <add>, %57, %cst_26 [1] : vector<8x128xf32> to vector<8xf32>
    %59 = vector.shape_cast %58 : vector<8xf32> to vector<8x1xf32>
    %60 = arith.mulf %51, %59 : vector<8x1xf32>
    %cst_27 = arith.constant 2.000000e+00 : f32
    %cst_28 = arith.constant 1.000000e+00 : f32
    %61 = arith.mulf %cst_27, %cst_28 : f32
    %62 = vector.broadcast %61 : f32 to vector<8x1xf32>
    %63 = arith.mulf %62, %60 : vector<8x1xf32>
    %cst_29 = arith.constant 1.000000e+00 : f32
    %64 = vector.broadcast %cst_29 : f32 to vector<8x1xf32>
    %65 = arith.addf %64, %63 : vector<8x1xf32>
    %cst_30 = arith.constant 1.000000e+00 : f32
    %66 = arith.mulf %cst_30, %55 : f32
    %67 = vector.broadcast %66 : f32 to vector<8x1xf32>
    %68 = arith.addf %65, %67 : vector<8x1xf32>
    %cst_31 = arith.constant 1.000000e+00 : f32
    %69 = vector.broadcast %cst_31 : f32 to vector<8x1xf32>
    %70 = arith.mulf %69, %53 : vector<8x1xf32>
    %cst_32 = arith.constant 1.000000e+00 : f32
    %71 = vector.broadcast %cst_32 : f32 to vector<8x1xf32>
    %72 = arith.subf %71, %70 : vector<8x1xf32>
    %cst_33 = arith.constant 2.000000e+00 : f32
    %cst_34 = arith.constant 1.000000e+00 : f32
    %73 = arith.mulf %cst_33, %cst_34 : f32
    %74 = vector.broadcast %73 : f32 to vector<8x1xf32>
    %75 = arith.mulf %74, %60 : vector<8x1xf32>
    %cst_35 = arith.constant 1.000000e+00 : f32
    %76 = vector.broadcast %cst_35 : f32 to vector<8x1xf32>
    %77 = arith.addf %76, %75 : vector<8x1xf32>
    %cst_36 = arith.constant 1.000000e+00 : f32
    %cst_37 = arith.constant 1.000000e+00 : f32
    %78 = arith.mulf %cst_36, %cst_37 : f32
    %79 = vector.broadcast %78 : f32 to vector<8x1xf32>
    %80 = arith.mulf %79, %53 : vector<8x1xf32>
    %81 = vector.broadcast %55 : f32 to vector<8x1xf32>
    %82 = arith.mulf %80, %81 : vector<8x1xf32>
    %83 = arith.addf %77, %82 : vector<8x1xf32>
    %cst_38 = arith.constant 1.000000e-15 : f32
    %84 = vector.broadcast %cst_38 : f32 to vector<8x1xf32>
    %85 = arith.maximumf %83, %84 : vector<8x1xf32>
    %cst_39 = arith.constant 1.000000e+00 : f32
    %86 = vector.broadcast %cst_39 : f32 to vector<8x1xf32>
    %87 = arith.divf %86, %85 : vector<8x1xf32>
    %88 = arith.mulf %68, %87 : vector<8x1xf32>
    %89 = arith.mulf %88, %51 : vector<8x1xf32>
    %90 = arith.mulf %72, %87 : vector<8x1xf32>
    %91 = arith.mulf %89, %89 : vector<8x1xf32>
    %92 = arith.mulf %91, %11 : vector<8x1xf32>
    %93 = arith.mulf %89, %90 : vector<8x1xf32>
    %cst_40 = arith.constant 2.000000e+00 : f32
    %94 = vector.broadcast %cst_40 : f32 to vector<8x1xf32>
    %95 = arith.mulf %94, %93 : vector<8x1xf32>
    %96 = arith.mulf %95, %59 : vector<8x1xf32>
    %97 = arith.addf %92, %96 : vector<8x1xf32>
    %98 = arith.mulf %90, %90 : vector<8x1xf32>
    %99 = vector.broadcast %55 : f32 to vector<8x1xf32>
    %100 = arith.mulf %98, %99 : vector<8x1xf32>
    %101 = arith.addf %97, %100 : vector<8x1xf32>
    %cst_41 = arith.constant 0.000000e+00 : f32
    %102 = vector.broadcast %cst_41 : f32 to vector<8x1xf32>
    %103 = arith.maximumf %101, %102 : vector<8x1xf32>
    %104 = math.sqrt %103 : vector<8x1xf32>
    %cst_42 = arith.constant 1.000000e-15 : f32
    %105 = vector.broadcast %cst_42 : f32 to vector<8x1xf32>
    %106 = arith.maximumf %104, %105 : vector<8x1xf32>
    %cst_43 = arith.constant 0.995999991 : f32
    %cst_44 = arith.constant 1.000000e+00 : f32
    %107 = arith.divf %cst_43, %cst_44 : f32
    %108 = vector.broadcast %107 : f32 to vector<8x1xf32>
    %109 = arith.cmpf ogt, %106, %108 : vector<8x1xf32>
    %110 = vector.broadcast %107 : f32 to vector<8x1xf32>
    %111 = arith.divf %110, %106 : vector<8x1xf32>
    %cst_45 = arith.constant 1.000000e+00 : f32
    %112 = vector.broadcast %cst_45 : f32 to vector<8x1xf32>
    %113 = arith.select %109, %111, %112 : vector<8x1xi1>, vector<8x1xf32>
    %114 = arith.mulf %113, %113 : vector<8x1xf32>
    %115 = arith.mulf %114, %103 : vector<8x1xf32>
    %116 = math.sqrt %115 : vector<8x1xf32>
    %cst_46 = arith.constant 1.000000e-15 : f32
    %117 = vector.broadcast %cst_46 : f32 to vector<8x1xf32>
    %118 = arith.maximumf %116, %117 : vector<8x1xf32>
    %cst_47 = arith.constant 1.000000e+00 : f32
    %119 = vector.broadcast %cst_47 : f32 to vector<8x1xf32>
    %120 = arith.mulf %119, %118 : vector<8x1xf32>
    %cst_48 = arith.constant -0.99999988 : f32
    %cst_49 = arith.constant 0.99999988 : f32
    %121 = vector.broadcast %cst_48 : f32 to vector<8x1xf32>
    %122 = arith.maximumf %121, %120 : vector<8x1xf32>
    %123 = vector.broadcast %cst_49 : f32 to vector<8x1xf32>
    %124 = arith.minimumf %123, %122 : vector<8x1xf32>
    %cst_50 = arith.constant 1.000000e+00 : f32
    %125 = vector.broadcast %cst_50 : f32 to vector<8x1xf32>
    %126 = arith.addf %125, %124 : vector<8x1xf32>
    %cst_51 = arith.constant 1.000000e+00 : f32
    %127 = vector.broadcast %cst_51 : f32 to vector<8x1xf32>
    %128 = arith.subf %127, %124 : vector<8x1xf32>
    %129 = arith.divf %126, %128 : vector<8x1xf32>
    %130 = math.log %129 : vector<8x1xf32>
    %cst_52 = arith.constant 5.000000e-01 : f32
    %131 = vector.broadcast %cst_52 : f32 to vector<8x1xf32>
    %132 = arith.mulf %131, %130 : vector<8x1xf32>
    %cst_53 = arith.constant 1.000000e+00 : f32
    %133 = vector.broadcast %cst_53 : f32 to vector<8x1xf32>
    %134 = arith.mulf %133, %118 : vector<8x1xf32>
    %135 = arith.divf %132, %134 : vector<8x1xf32>
    %136 = arith.mulf %113, %135 : vector<8x1xf32>
    %137 = arith.mulf %136, %89 : vector<8x1xf32>
    %138 = arith.mulf %136, %90 : vector<8x1xf32>
    %139 = vector.broadcast %137 : vector<8x1xf32> to vector<8x128xf32>
    %140 = arith.mulf %139, %8 : vector<8x128xf32>
    %141 = vector.broadcast %138 : vector<8x1xf32> to vector<8x128xf32>
    %142 = vector.broadcast %54 : vector<1x128xf32> to vector<8x128xf32>
    %143 = arith.mulf %141, %142 : vector<8x128xf32>
    %144 = arith.addf %140, %143 : vector<8x128xf32>
    %cst_54 = arith.constant 0.000000e+00 : f32
    %145 = vector.broadcast %cst_54 : f32 to vector<8x128xf32>
    %146 = arith.maximumf %144, %145 : vector<8x128xf32>
    %147 = arith.mulf %146, %146 : vector<8x128xf32>
    %cst_55 = arith.constant dense<0.000000e+00> : vector<8xf32>
    %148 = vector.multi_reduction <add>, %147, %cst_55 [1] : vector<8x128xf32> to vector<8xf32>
    %149 = vector.shape_cast %148 : vector<8xf32> to vector<8x1xf32>
    %150 = math.sqrt %149 : vector<8x1xf32>
    %cst_56 = arith.constant 1.000000e-15 : f32
    %151 = vector.broadcast %cst_56 : f32 to vector<8x1xf32>
    %152 = arith.maximumf %150, %151 : vector<8x1xf32>
    %cst_57 = arith.constant 1.000000e+00 : f32
    %153 = vector.broadcast %cst_57 : f32 to vector<8x1xf32>
    %154 = arith.mulf %153, %152 : vector<8x1xf32>
    %155 = math.tanh %154 : vector<8x1xf32>
    %cst_58 = arith.constant 1.000000e+00 : f32
    %156 = vector.broadcast %cst_58 : f32 to vector<8x1xf32>
    %157 = arith.mulf %156, %152 : vector<8x1xf32>
    %158 = arith.divf %155, %157 : vector<8x1xf32>
    %159 = arith.mulf %158, %158 : vector<8x1xf32>
    %160 = arith.mulf %159, %149 : vector<8x1xf32>
    %161 = math.sqrt %160 : vector<8x1xf32>
    %cst_59 = arith.constant 1.000000e-15 : f32
    %162 = vector.broadcast %cst_59 : f32 to vector<8x1xf32>
    %163 = arith.maximumf %161, %162 : vector<8x1xf32>
    %cst_60 = arith.constant 0.995999991 : f32
    %cst_61 = arith.constant 1.000000e+00 : f32
    %164 = arith.divf %cst_60, %cst_61 : f32
    %165 = vector.broadcast %164 : f32 to vector<8x1xf32>
    %166 = arith.cmpf ogt, %163, %165 : vector<8x1xf32>
    %167 = vector.broadcast %164 : f32 to vector<8x1xf32>
    %168 = arith.divf %167, %163 : vector<8x1xf32>
    %cst_62 = arith.constant 1.000000e+00 : f32
    %169 = vector.broadcast %cst_62 : f32 to vector<8x1xf32>
    %170 = arith.select %166, %168, %169 : vector<8x1xi1>, vector<8x1xf32>
    %171 = arith.mulf %158, %170 : vector<8x1xf32>
    %172 = vector.broadcast %171 : vector<8x1xf32> to vector<8x128xf32>
    %173 = arith.mulf %172, %146 : vector<8x128xf32>
    %c0_63 = arith.constant 0 : index
    %c0_64 = arith.constant 0 : index
    %174 = vector.load %arg6[%c0_63, %c0_64] : memref<8x128xf32, #tpu.memory_space<vmem>>, vector<8x128xf32>
    tpu.vector_store %arg6[%c0_63, %c0_64], %173 {strides = array<i32>} : memref<8x128xf32, #tpu.memory_space<vmem>>, vector<8x128xf32>,
    return
  }
  func.func @transform_0(%arg0: i32) -> (i32, i32) {
    %c0_i32 = arith.constant 0 : i32
    %c0_i32_0 = arith.constant 0 : i32
    return %arg0, %c0_i32 : i32, i32
  }
  func.func @transform_1(%arg0: i32) -> (i32, i32) {
    %c0_i32 = arith.constant 0 : i32
    %c0_i32_0 = arith.constant 0 : i32
    %c0_i32_1 = arith.constant 0 : i32
    return %c0_i32, %c0_i32_0 : i32, i32
  }
  func.func @transform_2(%arg0: i32) -> (i32, i32) {
    %c0_i32 = arith.constant 0 : i32
    %c0_i32_0 = arith.constant 0 : i32
    %c0_i32_1 = arith.constant 0 : i32
    return %c0_i32, %c0_i32_0 : i32, i32
  }
  func.func @transform_3(%arg0: i32) -> (i32, i32) {
    %c0_i32 = arith.constant 0 : i32
    %c0_i32_0 = arith.constant 0 : i32
    %c0_i32_1 = arith.constant 0 : i32
    return %c0_i32, %c0_i32_0 : i32, i32
  }
  func.func @transform_4(%arg0: i32) -> i32 {
    %c0_i32 = arith.constant 0 : i32
    %c0_i32_0 = arith.constant 0 : i32
    return %c0_i32 : i32
  }
  func.func @transform_5(%arg0: i32) -> (i32, i32) {
    %c0_i32 = arith.constant 0 : i32
    %c0_i32_0 = arith.constant 0 : i32
    return %arg0, %c0_i32 : i32, i32
  }
}

</mosaic_0001>

<bundles_post_ra>
// kernel: tpu_custom_call.1
= control target key start
LH: loop header
LB: loop body
LE: loop exit
PB: predicated region body
PF: predicated region fallthrough
CT: control target
= control target key end

     0   :  { %s1233_s0 = inlined_call_operand.hbm [shape: f32[16,32], index: 0, kind: input, shape index: {}]   ;;  %s1234_s1 = inlined_call_operand.hbm [shape: f32[32,128], index: 1, kind: input, shape index: {}]   ;;  %s1235_s2 = inlined_call_operand.hbm [shape: f32[32,128], index: 2, kind: input, shape index: {}]   ;;  %s1236_s3 = inlined_call_operand.vmem [shape: f32[1,128], index: 3, kind: input, shape index: {}]   ;;  %s1237_s4 = inlined_call_operand.<no memory space> [shape: f32[1], index: 4, kind: input, shape index: {}]   ;;  %s1238_s5 = inlined_call_operand.hbm [shape: f32[16,128], index: 5, kind: output, shape index: {}]  }
   0x1   :  { %10 = sst [smem:[#allocation2]] %s1237_s4 }
   0x2   :  { %11 = vsyncpa [#allocation4], 0 }
   0x3   :  { %13 = vsyncpa [#allocation4 + $0x1], 0 }
   0x4   :  { %14 = vsyncpa [#allocation7], 0 }
   0x5   :  { %15 = vsyncpa [#allocation5], 0 }
   0x6   :  { %17 = vsyncpa [#allocation5 + $0x1], 0  ;;  %s1045_s20 = smov 0   ;;  %s1047_s21 = smov 0  }
   0x7   :  { %s1049_s22 = smov 0   ;;  %s1051_s23 = smov 0  }
   0x8 LB: > { %s1066_s4 = sadd.s32 4294967295, %s1002_s23   ;;  %s688_s24 = sadd.s32 4294967294, %s1002_s23   ;;  %s1002_s23 = sphi %s1051_s23, %s1260_s23   ;;  %s998_s22 = sphi %s1049_s22, %s1259_s22   ;;  %s994_s21 = sphi %s1047_s21, %s1258_s21   ;;  %s990_s20 = sphi %s1045_s20, %s1257_s20  }
   0x9   : > { %p43_p0 = scmp.ne.s32.totalorder %s994_s21, %s990_s20  ;;  %p1239_p1 = scmp.eq.s32.totalorder %s1066_s4, 0 }
   0xa   : > { %p157_p3 = scmp.eq.s32.totalorder %s688_s24, 1  ;;  %p689_p5 = scmp.ge.s32.totalorder %s1002_s23, 1 }
   0xb   : > { %p1075_p4 = por %p1239_p1, %p43_p0  ;;  %p164_p7 = scmp.lt.s32.totalorder %s1002_s23, 3 }
   0xc   : > { %p1080_p6 = por %p157_p3, %p43_p0  ;;  %s1004_s28 = smov [#allocation6]  }
   0xd   : > { %s1243_s25 = scalar_select %p1075_p4, 1, 0 }
   0xe   : > { %s1244_s26 = scalar_select %p1080_p6, 1, 0 }
   0xf   : > { %p1085_p8 = pnand %p689_p5, %p164_p7  ;;  %s176_s29 = sshll.u32 %s1004_s28, 4  ;;  %s177_s29 = int_to_ptr.vmem [resolvable:$true] %s176_s29 }
  0x10   : > { %s1005_s6 = smov [#allocation8]   ;;  %s865_s8 = scalar_lea.vmem %s177_s29, 512 }
  0x11   : > { %s1245_s27 = scalar_select %p1085_p8, 1, 0 }
  0x12   : > { %p753_p9 = pneg %p1085_p8  ;;  %s189_s7 = sshll.u32 %s1005_s6, 4  ;;  %s190_s7 = int_to_ptr.vmem [resolvable:$true] %s189_s7 }
  0x13   : > { %p866_p13 = scmp.ne.s32.totalorder %s177_s29, %s865_s8  ;;  %p873_p5 = scmp.lt.s32.totalorder %s177_s29, %s177_s29 }
  0x14   : > { %p1094_p11 = pnand %p753_p9, %p1239_p1  ;;  %p874_p7 = scmp.lt.s32.totalorder %s865_s8, %s865_s8 }
  0x16   : > { %p856_p12 = pneg %p1094_p11  ;;  %p875_p10 = por %p874_p7, %p873_p5 }
  0x18   : > { %p868_p0 = pnand %p866_p13, %p856_p12 }
  0x1a   : > { %p869_p3 = pneg %p868_p0 }
  0x1c   : > { %p876_p9 = pnand %p875_p10, %p869_p3 }
  0x1e   : > { %879 = shalt.err (!%p876_p9)
}
  0x1f   : > { %s1006_s9 = smov 128   ;;  %s1007_s10 = smov 8  }
  0x20   : > { %756 = dma.hbm_to_vmem [thread:$0]  (!%p1094_p11), %s1234_s1, 512, %s177_s29, [#allocation7], %s1006_s9, %s1006_s9, %s1007_s10  }
  0x21   : > { %s891_s13 = scalar_lea.vmem %s190_s7, 512  ;;  %p899_p2 = scmp.lt.s32.totalorder %s190_s7, %s190_s7 }
  0x22   : > { %p892_p1 = scmp.ne.s32.totalorder %s190_s7, %s891_s13  ;;  %p900_p6 = scmp.lt.s32.totalorder %s891_s13, %s891_s13 }
  0x24   : > { %p894_p13 = pnand %p892_p1, %p856_p12  ;;  %p901_p5 = por %p900_p6, %p899_p2 }
  0x26   : > { %p895_p0 = pneg %p894_p13 }
  0x28   : > { %p902_p10 = pnand %p901_p5, %p895_p0 }
  0x2a   : > { %905 = shalt.err (!%p902_p10)
}
  0x2b   : > { %759 = dma.hbm_to_vmem [thread:$0]  (!%p1094_p11), %s1235_s2, 512, %s190_s7, [#allocation7], %s1006_s9, %s1006_s9, %s1007_s10  }
  0x2c   : > { %s1117_s16 = sadd.s32 1, %s1002_s23   ;;  %s30_s17 = sadd.s32 1, %s998_s22 }
  0x2d   : > { %s27_s18 = ssub.s32 %s1002_s23, %s1117_s16  ;;  %p37_p1 = scmp.ne.s32.totalorder %s998_s22, %s994_s21 }
  0x2e   : > { %p28_p2 = scmp.eq.s32.totalorder %s27_s18, 0  ;;  %p38_p6 = scmp.eq.s32.totalorder %s1002_s23, 0 }
  0x2f   : > { %p1247_p12 = scmp.eq.s32.totalorder %s1066_s4, 1  ;;  %p770_p7 = scmp.lt.s32.totalorder %s1002_s23, 2 }
  0x30   : > { %s1133_s24 = scalar_select %p28_p2, %s998_s22, %s30_s17  }
  0x31   : > { %p1127_p3 = por %p1247_p12, %p37_p1  ;;  %p39_p9 = por %p38_p6, %p37_p1 }
  0x32   : > { %s209_s28 = sand.u32 1, %s998_s22   ;;  %s694_s30 = sshll.u32 %s1002_s23, 7 }
  0x33   : > { %s1248_s19 = scalar_select %p1127_p3, 1, 0 }
  0x34   : > { %s693_s29 = sshll.u32 %s209_s28, 3  ;;  %s1140_s8 = scalar_lea.hbm %s1233_s0, %s694_s30 }
  0x35   : > { %s213_s9 = scalar_lea.vmem [#allocation3], %s693_s29  ;;  %p1142_p11 = pnand %p770_p7, %p39_p9 }
  0x36   : > { %s220_s10 = sshll.u32 %s213_s9, 4  ;;  %s210_s12 = scalar_lea.sflag [#allocation4], %s209_s28  ;;  %s221_s10 = int_to_ptr.vmem [resolvable:$true] %s220_s10 }
  0x37   : > { %s906_s13 = scalar_lea.hbm %s1140_s8, 128  ;;  %p908_p0 = pneg %p1142_p11 }
  0x38   : > { %p907_p13 = scmp.ne.s32.totalorder %s1140_s8, %s906_s13  ;;  %s911_s17 = scalar_lea.hbm %s1233_s0, 256 }
  0x39   : > { %p912_p1 = scmp.lt.s32.totalorder %s1140_s8, %s1233_s0  ;;  %p913_p2 = scmp.lt.s32.totalorder %s911_s17, %s906_s13 }
  0x3a   : > { %p909_p5 = pnand %p908_p0, %p907_p13 }
  0x3b   : > { %p914_p6 = por %p913_p2, %p912_p1 }
  0x3c   : > { %p910_p10 = pneg %p909_p5 }
  0x3e   : > { %p915_p12 = pnand %p914_p6, %p910_p10 }
  0x40   : > { %918 = shalt.err (!%p915_p12)
}
  0x41   : > { %s919_s30 = scalar_lea.vmem %s221_s10, 128  ;;  %s1008_s28 = smov [#allocation3]  }
  0x42   : > { %p920_p7 = scmp.ne.s32.totalorder %s221_s10, %s919_s30  ;;  %s924_s6 = sshll.u32 %s1008_s28, 4  ;;  %s925_s6 = int_to_ptr.vmem [resolvable:$false] %s924_s6 }
  0x43   : > { %s926_s7 = scalar_lea.vmem %s925_s6, 256  ;;  %p927_p13 = scmp.lt.s32.totalorder %s221_s10, %s925_s6 }
  0x44   : > { %p922_p9 = pnand %p920_p7, %p908_p0  ;;  %p928_p5 = scmp.lt.s32.totalorder %s926_s7, %s919_s30 }
  0x46   : > { %p923_p3 = pneg %p922_p9  ;;  %p929_p4 = por %p928_p5, %p927_p13 }
  0x48   : > { %p930_p8 = pnand %p929_p4, %p923_p3 }
  0x4a   : > { %933 = shalt.err (!%p930_p8)
}
  0x4b   : > { %763 = dma.hbm_to_vmem [thread:$0]  (!%p1142_p11), %s1140_s8, 128, %s221_s10, %s210_s12  }
  0x4c   : > { %p1250_p10 = scmp.ne.s32.totalorder %s1245_s27, 0 }
  0x4d   : > { %s1163_s9 = sand.u32 (!%p1250_p10), 1, %s994_s21   ;;  %p1251_p4 = scmp.ne.s32.totalorder (!%p1250_p10), %s1243_s25, 0 }
  0x4e   : > { %229 = sbr.rel (%p1250_p10) target bundleno = 900 (0x384), region = 40  ;;  %s696_s13 = sshll.u32 (!%p1250_p10), %s1163_s9, 3 }
  0x4f   : > { %s232_s14 = scalar_lea.sflag (!%p1250_p10), [#allocation4], %s1163_s9  ;;  %s235_s15 = scalar_lea.vmem (!%p1250_p10), [#allocation3], %s696_s13 }
  0x53   : > { %977 = dma.done.wait (%p1251_p4), %s232_s14, 128  }
  0x54   : > { %979 = vsyncadd (%p1251_p4), %s232_s14, 4294967168  ;;  %p1252_p8 = scmp.eq.s32.totalorder %s1066_s4, 0 }
  0x56   : > { %981 = dma.done.wait (%p1252_p8), [#allocation7], 1024   ;;  %p1253_p3 = pmov %p1252_p8 }
  0x57   : > { %v1009_v0 = vmov 0.0   ;;  %vm1010_vm0 = vmmov 0   ;;  %v274_v1 = vld [vmem:[#allocation6 + $0x18] sm:$0xff]  ;;  %v273_v2 = vld [vmem:[#allocation6 + $0x10] sm:$0xff]  ;;  %v272_v5 = vld [vmem:[#allocation6 + $0x8] sm:$0xff]  ;;  %vm276_vm1 = vcmask 261120  }
  0x58   : > { %983 = vsyncadd (%p1253_p3), [#allocation7], 4294966272  ;;  %719 = vmatprep.subr.mxu0 %v1009_v0  ;;  %727 = vmatprep.mubr.msk.f32.mxu0 %vm1010_vm0, %v1009_v0  ;;  %v270_v3 = vld [vmem:[%s235_s15] sm:$0xff]  ;;  %v409_v8 = vld [vmem:[#allocation8 + $0x8] sm:$0xff]  ;;  %s407_s25 = sld [smem:[#allocation2]]  ;;  %s706_s10 = sshll.u32 %s1066_s4, 7 }
  0x59   : > { %730 = vmatprep.subr.mxu1 %v1009_v0  ;;  %738 = vmatprep.mubr.msk.f32.mxu1 %vm1010_vm0, %v1009_v0  ;;  %v411_v4 = vld [vmem:[#allocation8 + $0x18] sm:$0xff]  ;;  %v410_v6 = vld [vmem:[#allocation8 + $0x10] sm:$0xff]  ;;  %v275_v7 = vmul.f32 %v270_v3, %v270_v3  ;;  %v271_v9 = vld [vmem:[#allocation6] sm:$0xff]  ;;  %s269_s11 = scalar_lea.vmem [#allocation9], %s696_s13  ;;  %s597_s29 = scalar_lea.hbm %s1238_s5, %s706_s10 }
  0x5a   : > { %720 = vmatpush3.msra.mxu0 %v274_v1  ;;  %731 = vmatpush3.msra.mxu1 %v411_v4  ;;  %v408_v10 = vld [vmem:[#allocation8] sm:$0xff]  ;;  %s599_s12 = sshll.u32 %s269_s11, 4  ;;  %s586_s30 = scalar_lea.sflag [#allocation5], %s1163_s9  ;;  %s600_s12 = int_to_ptr.vmem [resolvable:$true] %s599_s12 }
  0x5b   : > { %721 = vmatprep.subr.mxu0 %v1009_v0  ;;  %732 = vmatprep.subr.mxu1 %v1009_v0  ;;  %v277_v11 = vsel %vm276_vm1, %v275_v7, 0.0  ;;  %s934_s28 = scalar_lea.vmem %s600_s12, 128  ;;  %p1254_p0 = scmp.ne.s32.totalorder %s1248_s19, 0 }
  0x5c   : > { %722 = vmatpush3.msra.mxu0 %v273_v2  ;;  %733 = vmatpush3.msra.mxu1 %v410_v6  ;;  %p935_p11 = scmp.ne.s32.totalorder %s600_s12, %s934_s28  ;;  %s1011_s6 = smov [#allocation9]  }
  0x5d   : > { %723 = vmatprep.subr.mxu0 %v1009_v0  ;;  %734 = vmatprep.subr.mxu1 %v1009_v0  ;;  %s938_s7 = sshll.u32 %s1011_s6, 4  ;;  %s939_s7 = int_to_ptr.vmem [resolvable:$false] %s938_s7 }
  0x5e   : > { %724 = vmatpush3.msra.mxu0 %v272_v5  ;;  %735 = vmatpush3.msra.mxu1 %v409_v8  ;;  %v487_v61 = vstv %s407_s25  ;;  %p936_p1 = pnand %p935_p11, %p1254_p0  ;;  %s940_s4 = scalar_lea.vmem %s939_s7, 256 }
  0x5f   : > { %725 = vmatprep.subr.mxu0 %v1009_v0  ;;  %736 = vmatprep.subr.mxu1 %v1009_v0  ;;  %p941_p6 = scmp.lt.s32.totalorder %s600_s12, %s939_s7  ;;  %p942_p12 = scmp.lt.s32.totalorder %s940_s4, %s934_s28 }
  0x60   : > { %726 = vmatpush3.msra.mxu0 %v271_v9  ;;  %737 = vmatpush3.msra.mxu1 %v408_v10  ;;  %p937_p2 = pneg %p936_p1 }
  0x61   : > { %728 = vmatmul.mubr.msk.f32.vlgmr.msra.gmra.mxu0 %vm276_vm1, %v270_v3  ;;  %739 = vmatmul.mubr.msk.f32.vlgmr.msra.gmra.mxu1 %vm276_vm1, %v270_v3  ;;  %p943_p7 = por %p942_p12, %p941_p6 }
  0x62   : > { %278 = vadd.xlane.f32.xlu0 %v277_v11 }
  0x63   : > { %p944_p9 = pnand %p943_p7, %p937_p2 }
  0xeb   : > { %v279_v17 = vpop.xlane.xlu0 %278 }
  0xec   : > { %812 = vrsqrt.f32 %v279_v17  ;;  %vm282_vm2 = vcmp.eq.f32.partialorder %v279_v17, inf  ;;  %v285_v20 = vand.u32 2147483648, %v279_v17  ;;  %vm284_vm3 = vcmp.eq.f32.partialorder %v279_v17, 0.0 }
  0xf9   : > { %v813_v18 = vpop.eup %812 }
  0xfa   : > { %v281_v19 = vmul.f32 %v813_v18, %v279_v17 }
  0xfc   : > { %v283_v21 = vsel %vm282_vm2, %v279_v17, %v281_v19 }
  0xfd   : > { %v286_v22 = vsel %vm284_vm3, %v285_v20, %v283_v21 }
  0xfe   : > { %v287_v23 = vmax.f32 %v286_v22, 1e-15 }
 0x100   : > { %v701_v24 = vclamps-f32 %v287_v23, 0.9999999 }
 0x102   : > { %v377_v25 = vsub.f32 1.0, %v701_v24  ;;  %v376_v26 = vadd.f32 1.0, %v701_v24 }
 0x104   : > { %814 = vrcp.f32 %v377_v25 }
 0x111   : > { %v815_v27 = vpop.eup %814 }
 0x112   : > { %v379_v28 = vmul.f32 %v815_v27, %v376_v26 }
 0x114   : > { %816 = vlog2.f32 %v379_v28 }
 0x121   : > { %v1177_v12 = vpop.f32.mrf.mxu0  ;;  %v478_v14 = vpop.f32.mrf.mxu1 }
 0x122   : > { %v361_v13 = vmul.f32 %v1177_v12, %v1177_v12  ;;  %482 = vadd.xlane.f32.xlu1 %v478_v14  ;;  %v817_v30 = vpop.eup %816 }
 0x123   : > { %v729_v15 = vpop.f32.mrf.mxu0  ;;  %v740_v16 = vpop.f32.mrf.mxu1  ;;  %v381_v35 = vmul.f32 0.6931472, %v817_v30 }
 0x124   : > { %362 = vadd.xlane.f32.xlu0 %v361_v13 }
 0x125   : > { %v382_v40 = vmul.f32 0.5, %v381_v35 }
 0x1ab   : > { %v483_v56 = vpop.xlane.xlu1 %482 }
 0x1ad   : > { %v1181_v29 = vpop.xlane.xlu0 %362 }
 0x1ae   : > { %818 = vrsqrt.f32 %v1181_v29  ;;  %vm366_vm4 = vcmp.eq.f32.partialorder %v1181_v29, inf  ;;  %v369_v33 = vand.u32 2147483648, %v1181_v29  ;;  %vm368_vm5 = vcmp.eq.f32.partialorder %v1181_v29, 0.0 }
 0x1af   : > { %820 = vrcp.f32 %v287_v23 }
 0x1bb   : > { %v819_v31 = vpop.eup %818 }
 0x1bc   : > { %v365_v32 = vmul.f32 %v819_v31, %v1181_v29  ;;  %v821_v38 = vpop.eup %820 }
 0x1be   : > { %v367_v34 = vsel %vm366_vm4, %v1181_v29, %v365_v32 }
 0x1bf   : > { %v370_v36 = vsel %vm368_vm5, %v369_v33, %v367_v34 }
 0x1c0   : > { %v371_v37 = vmax.f32 %v370_v36, 1e-15 }
 0x1c2   : > { %v373_v39 = vmul.f32 %v821_v38, %v371_v37  ;;  %822 = vrcp.f32 %v371_v37 }
 0x1c4   : > { %v383_v41 = vmul.f32 %v382_v40, %v373_v39 }
 0x1c6   : > { %824 = vtanh.f32 %v383_v41 }
 0x1cf   : > { %v823_v42 = vpop.eup %822 }
 0x1d3   : > { %v825_v43 = vpop.eup %824 }
 0x1d4   : > { %v386_v44 = vmul.f32 %v825_v43, %v823_v42 }
 0x1d6   : > { %v388_v45 = vsel %vm368_vm5, 0.0, %v386_v44 }
 0x1d7   : > { %v389_v46 = vmul.f32 %v388_v45, %v388_v45 }
 0x1d9   : > { %v390_v47 = vmul.f32 %v389_v46, %v1181_v29 }
 0x1db   : > { %826 = vrsqrt.f32 %v390_v47  ;;  %vm393_vm6 = vcmp.eq.f32.partialorder %v390_v47, inf  ;;  %v396_v50 = vand.u32 2147483648, %v390_v47  ;;  %vm395_vm7 = vcmp.eq.f32.partialorder %v390_v47, 0.0 }
 0x1e8   : > { %v827_v48 = vpop.eup %826 }
 0x1e9   : > { %v392_v49 = vmul.f32 %v827_v48, %v390_v47 }
 0x1eb   : > { %v394_v51 = vsel %vm393_vm6, %v390_v47, %v392_v49  ;;  %v704_v49 = vld [vmem:[%s1236_s3] ss:$0 sm:$0xff] }
 0x1ec   : > { %v397_v52 = vsel %vm395_vm7, %v396_v50, %v394_v51 }
 0x1ed   : > { %v398_v53 = vmax.f32 %v397_v52, 1e-15 }
 0x1ef   : > { %828 = vrcp.f32 %v398_v53  ;;  %vm399_vm8 = vcmp.gt.f32.partialorder %v398_v53, 0.996 }
 0x1fc   : > { %v829_v54 = vpop.eup %828 }
 0x1fd   : > { %v401_v55 = vmul.f32 0.996, %v829_v54 }
 0x1ff   : > { %v402_v57 = vsel %vm399_vm8, %v401_v55, 1.0 }
 0x200   : > { %v403_v58 = vmul.f32 %v402_v57, %v388_v45 }
 0x202   : > { %v404_v59 = vmul.f32 %v403_v58, %v403_v58  ;;  %v484_v60 = vmul.f32 %v483_v56, %v403_v58 }
 0x204   : > { %v405_v62 = vmul.f32 %v404_v59, %v1181_v29  ;;  %v485_v63 = vmul.f32 2.0, %v484_v60 }
 0x206   : > { %v486_v0 = vadd.f32 1.0, %v485_v63  ;;  %v490_v1 = vmul.f32 %v487_v61, %v405_v62  ;;  %v489_v6 = vsub.f32 1.0, %v405_v62 }
 0x208   : > { %v491_v2 = vadd.f32 %v490_v1, %v486_v0  ;;  %v488_v4 = vadd.f32 %v487_v61, %v486_v0 }
 0x20a   : > { %v492_v3 = vmax.f32 %v491_v2, 1e-15 }
 0x20c   : > { %830 = vrcp.f32 %v492_v3 }
 0x219   : > { %v831_v5 = vpop.eup %830 }
 0x21a   : > { %v495_v7 = vmul.f32 %v831_v5, %v488_v4  ;;  %v497_v9 = vmul.f32 %v831_v5, %v489_v6 }
 0x21c   : > { %v496_v8 = vmul.f32 %v495_v7, %v403_v58  ;;  %v504_v14 = vmul.f32 %v497_v9, %v497_v9 }
 0x21e   : > { %v498_v10 = vmul.f32 %v496_v8, %v496_v8  ;;  %v500_v11 = vmul.f32 %v497_v9, %v496_v8  ;;  %v505_v18 = vmul.f32 %v504_v14, %v487_v61 }
 0x220   : > { %v501_v13 = vmul.f32 2.0, %v500_v11  ;;  %v499_v15 = vmul.f32 %v498_v10, %v1181_v29 }
 0x222   : > { %v502_v16 = vmul.f32 %v501_v13, %v483_v56 }
 0x224   : > { %v503_v17 = vadd.f32 %v502_v16, %v499_v15 }
 0x226   : > { %v506_v19 = vadd.f32 %v505_v18, %v503_v17 }
 0x228   : > { %v507_v20 = vmax.f32 %v506_v19, 0.0 }
 0x22a   : > { %832 = vrsqrt.f32 %v507_v20  ;;  %vm510_vm9 = vcmp.eq.f32.partialorder %v507_v20, inf  ;;  %v513_v23 = vand.u32 2147483648, %v507_v20  ;;  %vm512_vm10 = vcmp.eq.f32.partialorder %v507_v20, 0.0 }
 0x237   : > { %v833_v21 = vpop.eup %832 }
 0x238   : > { %v509_v22 = vmul.f32 %v833_v21, %v507_v20 }
 0x23a   : > { %v511_v24 = vsel %vm510_vm9, %v507_v20, %v509_v22 }
 0x23b   : > { %v514_v25 = vsel %vm512_vm10, %v513_v23, %v511_v24 }
 0x23c   : > { %v515_v26 = vmax.f32 %v514_v25, 1e-15 }
 0x23e   : > { %834 = vrcp.f32 %v515_v26  ;;  %vm516_vm11 = vcmp.gt.f32.partialorder %v515_v26, 0.996 }
 0x24b   : > { %v835_v27 = vpop.eup %834 }
 0x24c   : > { %v518_v28 = vmul.f32 0.996, %v835_v27 }
 0x24e   : > { %v519_v30 = vsel %vm516_vm11, %v518_v28, 1.0 }
 0x24f   : > { %v520_v29 = vmul.f32 %v519_v30, %v519_v30 }
 0x251   : > { %v521_v31 = vmul.f32 %v520_v29, %v507_v20 }
 0x253   : > { %836 = vrsqrt.f32 %v521_v31  ;;  %vm524_vm12 = vcmp.eq.f32.partialorder %v521_v31, inf  ;;  %v527_v34 = vand.u32 2147483648, %v521_v31  ;;  %vm526_vm13 = vcmp.eq.f32.partialorder %v521_v31, 0.0 }
 0x260   : > { %v837_v32 = vpop.eup %836 }
 0x261   : > { %v523_v33 = vmul.f32 %v837_v32, %v521_v31 }
 0x263   : > { %v525_v35 = vsel %vm524_vm12, %v521_v31, %v523_v33 }
 0x264   : > { %v528_v36 = vsel %vm526_vm13, %v527_v34, %v525_v35 }
 0x265   : > { %v529_v37 = vmax.f32 %v528_v36, 1e-15 }
 0x267   : > { %v703_v38 = vclamps-f32 %v529_v37, 0.9999999 }
 0x269   : > { %v533_v39 = vsub.f32 1.0, %v703_v38  ;;  %v532_v40 = vadd.f32 1.0, %v703_v38 }
 0x26b   : > { %838 = vrcp.f32 %v533_v39 }
 0x278   : > { %v839_v41 = vpop.eup %838 }
 0x279   : > { %v535_v42 = vmul.f32 %v839_v41, %v532_v40 }
 0x27b   : > { %840 = vlog2.f32 %v535_v42 }
 0x27c   : > { %842 = vrcp.f32 %v529_v37 }
 0x288   : > { %v841_v43 = vpop.eup %840 }
 0x289   : > { %v537_v44 = vmul.f32 0.6931472, %v841_v43  ;;  %v843_v46 = vpop.eup %842 }
 0x28b   : > { %v538_v45 = vmul.f32 0.5, %v537_v44 }
 0x28d   : > { %v540_v47 = vmul.f32 %v843_v46, %v538_v45 }
 0x28f   : > { %v541_v48 = vmul.f32 %v540_v47, %v519_v30 }
 0x291   : > { %v542_v50 = vmul.f32 %v541_v48, %v496_v8  ;;  %v543_v51 = vmul.f32 %v541_v48, %v497_v9 }
 0x293   : > { %v544_v52 = vmul.f32 %v542_v50, %v1177_v12  ;;  %v551_v53 = vmul.f32 %v704_v49, %v543_v51 }
 0x295   : > { %v552_v54 = vadd.f32 %v551_v53, %v544_v52 }
 0x297   : > { %v553_v55 = vmax.f32 %v552_v54, 0.0 }
 0x299   : > { %v554_v56 = vmul.f32 %v553_v55, %v553_v55 }
 0x29b   : > { %555 = vadd.xlane.f32.xlu1 %v554_v56 }
 0x324   : > { %v556_v57 = vpop.xlane.xlu1 %555 }
 0x325   : > { %844 = vrsqrt.f32 %v556_v57  ;;  %vm559_vm14 = vcmp.eq.f32.partialorder %v556_v57, inf  ;;  %v562_v60 = vand.u32 2147483648, %v556_v57  ;;  %vm561_vm15 = vcmp.eq.f32.partialorder %v556_v57, 0.0 }
 0x332   : > { %v845_v58 = vpop.eup %844 }
 0x333   : > { %v558_v59 = vmul.f32 %v845_v58, %v556_v57 }
 0x335   : > { %v560_v61 = vsel %vm559_vm14, %v556_v57, %v558_v59 }
 0x336   : > { %v563_v62 = vsel %vm561_vm15, %v562_v60, %v560_v61 }
 0x337   : > { %v564_v63 = vmax.f32 %v563_v62, 1e-15 }
 0x339   : > { %846 = vtanh.f32 %v564_v63 }
 0x33a   : > { %848 = vrcp.f32 %v564_v63 }
 0x346   : > { %v847_v0 = vpop.eup %846 }
 0x347   : > { %v849_v1 = vpop.eup %848 }
 0x348   : > { %v567_v12 = vmul.f32 %v849_v1, %v847_v0 }
 0x34a   : > { %v568_v2 = vmul.f32 %v567_v12, %v567_v12 }
 0x34c   : > { %v569_v3 = vmul.f32 %v568_v2, %v556_v57 }
 0x34e   : > { %850 = vrsqrt.f32 %v569_v3  ;;  %vm572_vm0 = vcmp.eq.f32.partialorder %v569_v3, inf  ;;  %v575_v6 = vand.u32 2147483648, %v569_v3  ;;  %vm574_vm1 = vcmp.eq.f32.partialorder %v569_v3, 0.0 }
 0x35b   : > { %v851_v4 = vpop.eup %850 }
 0x35c   : > { %v571_v5 = vmul.f32 %v851_v4, %v569_v3 }
 0x35e   : > { %v573_v7 = vsel %vm572_vm0, %v569_v3, %v571_v5 }
 0x35f   : > { %v576_v8 = vsel %vm574_vm1, %v575_v6, %v573_v7 }
 0x360   : > { %v577_v9 = vmax.f32 %v576_v8, 1e-15 }
 0x362   : > { %852 = vrcp.f32 %v577_v9  ;;  %vm578_vm2 = vcmp.gt.f32.partialorder %v577_v9, 0.996 }
 0x36f   : > { %v853_v10 = vpop.eup %852 }
 0x370   : > { %v580_v11 = vmul.f32 0.996, %v853_v10 }
 0x372   : > { %v581_v13 = vsel %vm578_vm2, %v580_v11, 1.0 }
 0x373   : > { %v582_v14 = vmul.f32 %v581_v13, %v567_v12 }
 0x375   : > { %v583_v15 = vmul.f32 %v582_v14, %v553_v55 }
 0x377   : > { %584 = vst [vmem:[%s269_s11] sm:$0xff] %v583_v15 }
 0x378   : > { %947 = shalt.err (!%p944_p9)
}
 0x379   : > { %s948_s13 = scalar_lea.hbm %s597_s29, 128  ;;  %s952_s15 = scalar_lea.hbm %s1238_s5, 256 }
 0x37a   : > { %p949_p13 = scmp.ne.s32.totalorder %s597_s29, %s948_s13  ;;  %p953_p4 = scmp.lt.s32.totalorder %s597_s29, %s1238_s5 }
 0x37b   : > { %p954_p8 = scmp.lt.s32.totalorder %s952_s15, %s948_s13 }
 0x37c   : > { %p950_p5 = pnand %p949_p13, %p1254_p0 }
 0x37d   : > { %p955_p3 = por %p954_p8, %p953_p4 }
 0x37e   : > { %p951_p10 = pneg %p950_p5 }
 0x380   : > { %p956_p11 = pnand %p955_p3, %p951_p10 }
 0x382   : > { %959 = shalt.err (!%p956_p11)
}
 0x383   : > { %751 = dma.vmem_to_hbm [thread:$0]  (%p1254_p0), %s600_s12, 128, %s597_s29, %s586_s30  }
 0x384 PF: > { %s611_s8 = sand.u32 1, %s990_s20   ;;  %p1255_p1 = scmp.ne.s32.totalorder %s1244_s26, 0 }
 0x385   : > { %p1256_p2 = scmp.ge.s32.totalorder %s1002_s23, 2  ;;  %s612_s10 = scalar_lea.sflag [#allocation5], %s611_s8 }
 0x387   : > { %p765_p6 = pnand %p1256_p2, %p1255_p1 }
 0x389   : > { %p766_p12 = pneg %p765_p6 }
 0x38b   : > { %985 = dma.done.wait (%p766_p12), %s612_s10, 128  }
 0x38c   : > { %987 = vsyncadd (%p766_p12), %s612_s10, 4294967168  ;;  %p20_p7 = scmp.ge.s32.totalorder %s1117_s16, 4   ;;  %s1257_s20 = smov %s994_s21 }
 0x38d   : > { %s1258_s21 = smov %s998_s22  ;;  %s1259_s22 = smov %s1133_s24 }
 0x38e   : > { %s1260_s23 = smov %s1117_s16  ;;  %22 = sbr.rel (!%p20_p7) target bundleno = 8 (0x8), region = 93 }
 0x393   :  { %617 = vsyncpa [#allocation4], 1 }
 0x394   :  { %619 = vsyncpa [#allocation4 + $0x1], 1 }
 0x395   :  { %620 = vsyncpa [#allocation7], 1 }
 0x396   :  { %621 = vsyncpa [#allocation5], 1 }
 0x397   :  { %623 = vsyncpa [#allocation5 + $0x1], 1 }

</bundles_post_ra>
